<compile_context>
chip_gen: v7x
topology: tpu7x:2x2x1
jax: 0.10.0
libtpu: 0.0.40
codegen_flags: <defaults>
</compile_context>

<pallas_src>
import functools

import jax
import jax.numpy as jnp
import numpy as np
from jax.experimental import pallas as pl
from jax.experimental.pallas import tpu as pltpu


def _stream_kernel(
    x_ref,              # (S*W, TB, F) bf16 : full scale/region stack for TB bag items
    we_ref, be_ref,     # (F, 64) bf16, (1, 64) f32    embedding_net Conv2d(F,64,1)
    w1_ref, b1_ref,     # (64, 32) bf16, (1, 32) f32   res_attention Conv2d(64,32,1)
    w2_ref, b2_ref,     # (1, 32) bf16,  (1, 1)  f32   res_attention Conv2d(32,1,1) (row)
    h_ref,              # out: (TB, 64) bf16           per-bag-item features
    *, n_scales, n_regions,
):
    f32 = jnp.float32
    we, be = we_ref[...], be_ref[...]
    w1, b1 = w1_ref[...], b1_ref[...]
    w2, b2 = w2_ref[...], b2_ref[...]
    inv_w = 1.0 / n_regions

    h = None
    # S and W are tiny; statically unrolled so the LLO scheduler sees everything.
    for s in range(n_scales):
        ep = None
        for w in range(n_regions):
            xs = x_ref[s * n_regions + w]                       # (TB, F) bf16, leading-dim slice
            # embedding_net: 1x1 conv over channels (bf16 MXU, f32 accumulate) + ReLU.
            e = jnp.maximum(
                jnp.dot(xs, we, preferred_element_type=f32) + be, 0.0)
            ep = e if ep is None else ep + e
        ep = ep * inv_w                                         # AdaptiveAvgPool2d over regions
        # res_attention: Conv2d(64,32,1)+ReLU, then the 1-wide Conv2d(32,1,1) as an
        # elementwise mul + lane reduce (VPU/XLU) instead of a 1-column MXU op.
        r1 = jnp.maximum(
            jnp.dot(ep.astype(jnp.bfloat16), w1,
                    preferred_element_type=f32) + b1, 0.0)      # (TB, 32)
        sc = jnp.sum(r1 * w2, axis=-1, keepdims=True) + b2      # (TB, 1) raw score
        term = ep * sc                                          # raw-score-weighted feature
        h = term if h is None else h + term                     # sum over scales
    h_ref[...] = h.astype(h_ref.dtype)


def _tail_kernel(
    h_ref,              # (B, 64) bf16
    wa1_ref, ba1_ref,   # (64, 32) bf16, (1, 32) f32   attention Linear(64,32)
    wa2_ref, ba2_ref,   # (1, 32) bf16,  (1, 1)  f32   attention Linear(32,1) (row)
    wf1_ref, bf1_ref,   # (64, 32) bf16, (1, 32) f32   fc6 Linear(64,32)
    wf2_ref, bf2_ref,   # (32, K) bf16,  (1, K)  f32   fc6 Linear(32,K)
    logits_ref,         # out: (1, K) f32
):
    f32 = jnp.float32
    h_bf = h_ref[...]                                           # (B, 64) bf16
    h = h_bf.astype(f32)

    # attention: Linear(64,32) + Tanh + Linear(32,1) (VPU dot for the 1-wide one).
    t = jnp.tanh(jnp.dot(h_bf, wa1_ref[...],
                         preferred_element_type=f32) + ba1_ref[...])        # (B, 32)
    a = jnp.sum(t * wa2_ref[...], axis=-1, keepdims=True) + ba2_ref[...]    # (B, 1)

    # masked_softmax with mask=None == numerically stable softmax over the bag.
    a_max = jnp.max(a, axis=0, keepdims=True)
    p = jnp.exp(a - a_max)
    denom = jnp.sum(p, axis=0, keepdims=True)
    attn = p / denom                                            # exact (one-shot op)

    # M = A @ h
    m = jnp.sum(attn * h, axis=0, keepdims=True)                # (1, 64)

    # fc6: Linear(64,32) + ReLU + Dropout(identity at inference) + Linear(32,K)
    f1 = jnp.maximum(
        jnp.dot(m.astype(jnp.bfloat16), wf1_ref[...],
                preferred_element_type=f32) + bf1_ref[...], 0.0)            # (1, 32)
    logits_ref[...] = (
        jnp.dot(f1.astype(jnp.bfloat16), wf2_ref[...],
                preferred_element_type=f32) + bf2_ref[...])                 # (1, K)


def _round_up(n, m):
    return (n + m - 1) // m * m


def _pick_bag_tile(B, SW, F, *, target, budget_bytes, min_split=1024):
    """Bag tile (rows): multiple of 16, sized against a VMEM budget.

    Keeps >= 2 tiles on the 'parallel' axis for large bags (v7x megacore)."""
    # Per-row VMEM: double-buffered bf16 x block + double-buffered bf16 h block
    # + f32 in-kernel intermediates (ep / r1 / h accumulator, with headroom).
    per_row = 2 * SW * F * 2 + 2 * 64 * 2 + 8 * 64 * 4
    cap = max(16, (budget_bytes // per_row) // 16 * 16)
    b16 = _round_up(max(B, 16), 16)
    tb = min(b16, target, cap)
    if b16 <= tb and b16 >= 2 * min_split:
        tb = _round_up(pl.cdiv(b16, 2), 16)     # split so both TensorCores get work
    return max(16, tb)


def csmil_forward_kernel_layout(x_swbf, params, *, n_scales, n_regions, tile_b=4096):
    """Forward on x already in kernel layout (S*W, B, F), feature-last."""
    SW, B, F = x_swbf.shape
    assert SW == n_scales * n_regions
    K = params["wf2"].shape[1]
    bf16, f32 = jnp.bfloat16, jnp.float32

    x_swbf = x_swbf.astype(bf16)

    # Size the bag tile against a working-set budget that fits v7x's 64 MiB VMEM
    # per TensorCore (v5e/v6e have 128 MiB, so the same cap is safe everywhere).
    budget = 36 << 20
    tb = _pick_bag_tile(B, SW, F, target=tile_b, budget_bytes=budget)
    n_tiles = pl.cdiv(B, tb)
    b_pad = n_tiles * tb
    if b_pad != B:
        x_swbf = jnp.pad(x_swbf, ((0, 0), (0, b_pad - B), (0, 0)))

    we = params["we"].astype(bf16)
    be = params["be"].astype(f32)
    w1 = params["w1"].astype(bf16)
    b1 = params["b1"].astype(f32)
    w2 = params["w2"].reshape(1, -1).astype(bf16)   # (32,1) -> (1,32) row for the VPU dot
    b2 = params["b2"].reshape(1, 1).astype(f32)

    flops = 2 * b_pad * SW * F * 64 + 2 * b_pad * n_scales * 64 * 32
    bytes_accessed = (SW * b_pad * F * 2 + b_pad * 64 * 2
                      + (F * 64 + 64 * 32 + 32) * 2)
    x_blk_bytes = SW * tb * F * 2
    h_blk_bytes = tb * 64 * 2
    work_bytes = 2 * x_blk_bytes + 2 * h_blk_bytes + 8 * tb * 64 * 4 + (1 << 20)
    vmem_limit = int(min(48 << 20, max(16 << 20, int(work_bytes * 1.25))))

    h = pl.pallas_call(
        functools.partial(_stream_kernel, n_scales=n_scales, n_regions=n_regions),
        out_shape=jax.ShapeDtypeStruct((b_pad, 64), bf16),
        grid_spec=pltpu.PrefetchScalarGridSpec(
            num_scalar_prefetch=0,
            grid=(n_tiles,),
            in_specs=[
                pl.BlockSpec((SW, tb, F), lambda i: (0, i, 0)),
                pl.BlockSpec((F, 64), lambda i: (0, 0)),
                pl.BlockSpec((1, 64), lambda i: (0, 0)),
                pl.BlockSpec((64, 32), lambda i: (0, 0)),
                pl.BlockSpec((1, 32), lambda i: (0, 0)),
                pl.BlockSpec((1, 32), lambda i: (0, 0)),
                pl.BlockSpec((1, 1), lambda i: (0, 0)),
            ],
            out_specs=pl.BlockSpec((tb, 64), lambda i: (i, 0)),
        ),
        compiler_params=pltpu.CompilerParams(
            dimension_semantics=("parallel",),
            vmem_limit_bytes=vmem_limit,
        ),
        cost_estimate=pl.CostEstimate(
            flops=flops, transcendentals=0, bytes_accessed=bytes_accessed),
    )(x_swbf, we, be, w1, b1, w2, b2)

    h = h[:B]   # drop padded bag rows

    tail_args = (
        h,
        params["wa1"].astype(bf16), params["ba1"].astype(f32),
        params["wa2"].reshape(1, -1).astype(bf16), params["ba2"].reshape(1, 1).astype(f32),
        params["wf1"].astype(bf16), params["bf1"].astype(f32),
        params["wf2"].astype(bf16), params["bf2"].astype(f32),
    )
    logits = pl.pallas_call(
        _tail_kernel,
        out_shape=jax.ShapeDtypeStruct((1, K), f32),
        in_specs=[pl.BlockSpec(memory_space=pltpu.MemorySpace.VMEM)] * len(tail_args),
        out_specs=pl.BlockSpec(memory_space=pltpu.MemorySpace.VMEM),
    )(*tail_args)
    return logits


@functools.partial(jax.jit, static_argnames=("tile_b",))
def csmil_forward(x, params, *, tile_b=4096):
    """x: (C, N, F, S, W) float — stacked PyTorch cluster list (each NCHW)."""
    C, N, F, S, W = x.shape
    # One-time relayout to feature-last (S*W, B, F); the bf16 cast fuses with the
    # transpose into a single f32-read / bf16-write pass.
    # TODO(synk): have the upstream feature extractor emit this layout directly.
    x_k = jnp.transpose(x, (3, 4, 0, 1, 2)).reshape(S * W, C * N, F).astype(jnp.bfloat16)
    return csmil_forward_kernel_layout(x_k, params, n_scales=S, n_regions=W,
                                       tile_b=tile_b)


def csmil_reference(x, params):
    """Pure-JAX f32 reference mirroring the PyTorch forward exactly. x: (C,N,F,S,W)."""
    C, N, F, S, W = x.shape
    res = []
    for c in range(C):
        hh = x[c]                                                  # (N, F, S, W)
        emb = []
        for s in range(S):
            v = jnp.einsum("nfw,fk->nkw", hh[:, :, s, :], params["we"]) \
                + params["be"].reshape(1, -1, 1)
            v = jnp.maximum(v, 0.0).mean(axis=2)                   # (N, 64) relu then avg over W
            emb.append(v)
        emb = jnp.stack(emb, axis=2)                               # (N, 64, S)
        r1 = jnp.maximum(jnp.einsum("nks,kj->njs", emb, params["w1"])
                         + params["b1"].reshape(1, -1, 1), 0.0)
        sc = jnp.einsum("njs,jo->nos", r1, params["w2"]) + params["b2"].reshape(1, -1, 1)
        final = jnp.einsum("nks,ns->nk", emb, sc[:, 0, :])         # (N, 64)
        res.append(final)
    h = jnp.concatenate(res, axis=0)                               # (B, 64)
    a = jnp.tanh(h @ params["wa1"] + params["ba1"]) @ params["wa2"] + params["ba2"]
    attn = jax.nn.softmax(a.T, axis=1)                             # (1, B)
    m = attn @ h                                                   # (1, 64)
    f1 = jnp.maximum(m @ params["wf1"] + params["bf1"], 0.0)
    return f1 @ params["wf2"] + params["bf2"]


if __name__ == "__main__":
    # Small shapes: cluster_num=2, batch(per cluster)=8, feature_size=128,
    # n_scales=2, regions(W)=4, n_classes=2  ->  bag size B=16.
    C, N, F, S, W, K = 2, 8, 128, 2, 4, 2

    key = jax.random.PRNGKey(0)
    keys = jax.random.split(key, 16)

    def init(k, shape, scale=0.05):
        return (scale * jax.random.normal(k, shape)).astype(jnp.float32)

    params = {
        "we": init(keys[0], (F, 64)),    "be": init(keys[1], (1, 64)),
        "w1": init(keys[2], (64, 32)),   "b1": init(keys[3], (1, 32)),
        "w2": init(keys[4], (32, 1)),    "b2": init(keys[5], (1, 1)),
        "wa1": init(keys[6], (64, 32)),  "ba1": init(keys[7], (1, 32)),
        "wa2": init(keys[8], (32, 1)),   "ba2": init(keys[9], (1, 1)),
        "wf1": init(keys[10], (64, 32)), "bf1": init(keys[11], (1, 32)),
        "wf2": init(keys[12], (32, K)),  "bf2": init(keys[13], (1, K)),
    }
    x = jax.random.normal(keys[14], (C, N, F, S, W), dtype=jnp.float32)

    out = jax.block_until_ready(csmil_forward(x, params))
    ref = jax.block_until_ready(csmil_reference(x, params))

    assert out.shape == (1, K), out.shape
    # bf16 MXU inputs + bf16 intermediate h (f32 accumulation) -> loosened tolerance
    # vs the f32 reference.
    assert np.allclose(np.asarray(out), np.asarray(ref), atol=5e-3, rtol=3e-2), (out, ref)
    print("KERNEL_OK")
</pallas_src>

<mosaic_0001>
module attributes {stable_mosaic.version = 11 : i64} {
  func.func @_stream_kernel(%arg0: i32, %arg1: memref<8x16x128xbf16, #tpu.memory_space<vmem>>, %arg2: memref<128x64xbf16, #tpu.memory_space<vmem>>, %arg3: memref<1x64xf32, #tpu.memory_space<vmem>>, %arg4: memref<64x32xbf16, #tpu.memory_space<vmem>>, %arg5: memref<1x32xf32, #tpu.memory_space<vmem>>, %arg6: memref<1x32xbf16, #tpu.memory_space<vmem>>, %arg7: memref<1x1xf32, #tpu.memory_space<vmem>>, %arg8: memref<16x64xbf16, #tpu.memory_space<vmem>>) attributes {dimension_semantics = [#tpu.dimension_semantics<parallel>], iteration_bounds = array<i64: 1>, scalar_prefetch = 0 : i64, scratch_operands = 0 : i64, tpu.core_type = #tpu.core_type<tc>, window_params = [{transform_indices = @transform_0, window_bounds = array<i64: 8, 16, 128>}, {pipeline_mode = #tpu.pipeline_mode<synchronous>, transform_indices = @transform_1, window_bounds = array<i64: 128, 64>}, {pipeline_mode = #tpu.pipeline_mode<synchronous>, transform_indices = @transform_2, window_bounds = array<i64: 1, 64>}, {pipeline_mode = #tpu.pipeline_mode<synchronous>, transform_indices = @transform_3, window_bounds = array<i64: 64, 32>}, {pipeline_mode = #tpu.pipeline_mode<synchronous>, transform_indices = @transform_4, window_bounds = array<i64: 1, 32>}, {pipeline_mode = #tpu.pipeline_mode<synchronous>, transform_indices = @transform_5, window_bounds = array<i64: 1, 32>}, {pipeline_mode = #tpu.pipeline_mode<synchronous>, transform_indices = @transform_6, window_bounds = array<i64: 1, 1>}, {transform_indices = @transform_7, window_bounds = array<i64: 16, 64>}]} {
    %c0 = arith.constant 0 : index
    %c0_0 = arith.constant 0 : index
    %0 = vector.load %arg2[%c0, %c0_0] : memref<128x64xbf16, #tpu.memory_space<vmem>>, vector<128x64xbf16>
    %c0_1 = arith.constant 0 : index
    %c0_2 = arith.constant 0 : index
    %1 = vector.load %arg3[%c0_1, %c0_2] : memref<1x64xf32, #tpu.memory_space<vmem>>, vector<1x64xf32>
    %c0_3 = arith.constant 0 : index
    %c0_4 = arith.constant 0 : index
    %2 = vector.load %arg4[%c0_3, %c0_4] : memref<64x32xbf16, #tpu.memory_space<vmem>>, vector<64x32xbf16>
    %c0_5 = arith.constant 0 : index
    %c0_6 = arith.constant 0 : index
    %3 = vector.load %arg5[%c0_5, %c0_6] : memref<1x32xf32, #tpu.memory_space<vmem>>, vector<1x32xf32>
    %c0_7 = arith.constant 0 : index
    %c0_8 = arith.constant 0 : index
    %4 = vector.load %arg6[%c0_7, %c0_8] : memref<1x32xbf16, #tpu.memory_space<vmem>>, vector<1x32xbf16>
    %c0_9 = arith.constant 0 : index
    %c0_10 = arith.constant 0 : index
    %5 = vector.load %arg7[%c0_9, %c0_10] : memref<1x1xf32, #tpu.memory_space<vmem>>, vector<1x1xf32>
    %c0_11 = arith.constant 0 : index
    %c0_12 = arith.constant 0 : index
    %c0_13 = arith.constant 0 : index
    %6 = vector.load %arg1[%c0_11, %c0_12, %c0_13] : memref<8x16x128xbf16, #tpu.memory_space<vmem>>, vector<1x16x128xbf16>
    %7 = vector.shape_cast %6 : vector<1x16x128xbf16> to vector<16x128xbf16>
    %cst = arith.constant dense<0.000000e+00> : vector<16x64xf32>
    %8 = tpu.matmul %7, %0, %cst {dimension_numbers = #tpu.dot_dimension_numbers<[1], [0], [0], [1], [0, 0, 1, 1], [], []>} : vector<16x128xbf16>, vector<128x64xbf16>, vector<16x64xf32> -> vector<16x64xf32>
    %9 = vector.broadcast %1 : vector<1x64xf32> to vector<16x64xf32>
    %10 = arith.addf %8, %9 : vector<16x64xf32>
    %cst_14 = arith.constant 0.000000e+00 : f32
    %11 = vector.broadcast %cst_14 : f32 to vector<16x64xf32>
    %12 = arith.maximumf %10, %11 : vector<16x64xf32>
    %c1 = arith.constant 1 : index
    %c0_15 = arith.constant 0 : index
    %c0_16 = arith.constant 0 : index
    %13 = vector.load %arg1[%c1, %c0_15, %c0_16] : memref<8x16x128xbf16, #tpu.memory_space<vmem>>, vector<1x16x128xbf16>
    %14 = vector.shape_cast %13 : vector<1x16x128xbf16> to vector<16x128xbf16>
    %cst_17 = arith.constant dense<0.000000e+00> : vector<16x64xf32>
    %15 = tpu.matmul %14, %0, %cst_17 {dimension_numbers = #tpu.dot_dimension_numbers<[1], [0], [0], [1], [0, 0, 1, 1], [], []>} : vector<16x128xbf16>, vector<128x64xbf16>, vector<16x64xf32> -> vector<16x64xf32>
    %16 = vector.broadcast %1 : vector<1x64xf32> to vector<16x64xf32>
    %17 = arith.addf %15, %16 : vector<16x64xf32>
    %cst_18 = arith.constant 0.000000e+00 : f32
    %18 = vector.broadcast %cst_18 : f32 to vector<16x64xf32>
    %19 = arith.maximumf %17, %18 : vector<16x64xf32>
    %20 = arith.addf %12, %19 : vector<16x64xf32>
    %c2 = arith.constant 2 : index
    %c0_19 = arith.constant 0 : index
    %c0_20 = arith.constant 0 : index
    %21 = vector.load %arg1[%c2, %c0_19, %c0_20] : memref<8x16x128xbf16, #tpu.memory_space<vmem>>, vector<1x16x128xbf16>
    %22 = vector.shape_cast %21 : vector<1x16x128xbf16> to vector<16x128xbf16>
    %cst_21 = arith.constant dense<0.000000e+00> : vector<16x64xf32>
    %23 = tpu.matmul %22, %0, %cst_21 {dimension_numbers = #tpu.dot_dimension_numbers<[1], [0], [0], [1], [0, 0, 1, 1], [], []>} : vector<16x128xbf16>, vector<128x64xbf16>, vector<16x64xf32> -> vector<16x64xf32>
    %24 = vector.broadcast %1 : vector<1x64xf32> to vector<16x64xf32>
    %25 = arith.addf %23, %24 : vector<16x64xf32>
    %cst_22 = arith.constant 0.000000e+00 : f32
    %26 = vector.broadcast %cst_22 : f32 to vector<16x64xf32>
    %27 = arith.maximumf %25, %26 : vector<16x64xf32>
    %28 = arith.addf %20, %27 : vector<16x64xf32>
    %c3 = arith.constant 3 : index
    %c0_23 = arith.constant 0 : index
    %c0_24 = arith.constant 0 : index
    %29 = vector.load %arg1[%c3, %c0_23, %c0_24] : memref<8x16x128xbf16, #tpu.memory_space<vmem>>, vector<1x16x128xbf16>
    %30 = vector.shape_cast %29 : vector<1x16x128xbf16> to vector<16x128xbf16>
    %cst_25 = arith.constant dense<0.000000e+00> : vector<16x64xf32>
    %31 = tpu.matmul %30, %0, %cst_25 {dimension_numbers = #tpu.dot_dimension_numbers<[1], [0], [0], [1], [0, 0, 1, 1], [], []>} : vector<16x128xbf16>, vector<128x64xbf16>, vector<16x64xf32> -> vector<16x64xf32>
    %32 = vector.broadcast %1 : vector<1x64xf32> to vector<16x64xf32>
    %33 = arith.addf %31, %32 : vector<16x64xf32>
    %cst_26 = arith.constant 0.000000e+00 : f32
    %34 = vector.broadcast %cst_26 : f32 to vector<16x64xf32>
    %35 = arith.maximumf %33, %34 : vector<16x64xf32>
    %36 = arith.addf %28, %35 : vector<16x64xf32>
    %cst_27 = arith.constant 2.500000e-01 : f32
    %37 = vector.broadcast %cst_27 : f32 to vector<16x64xf32>
    %38 = arith.mulf %36, %37 : vector<16x64xf32>
    %39 = arith.truncf %38 : vector<16x64xf32> to vector<16x64xbf16>
    %cst_28 = arith.constant dense<0.000000e+00> : vector<16x32xf32>
    %40 = tpu.matmul %39, %2, %cst_28 {dimension_numbers = #tpu.dot_dimension_numbers<[1], [0], [0], [1], [0, 0, 1, 1], [], []>} : vector<16x64xbf16>, vector<64x32xbf16>, vector<16x32xf32> -> vector<16x32xf32>
    %41 = vector.broadcast %3 : vector<1x32xf32> to vector<16x32xf32>
    %42 = arith.addf %40, %41 : vector<16x32xf32>
    %cst_29 = arith.constant 0.000000e+00 : f32
    %43 = vector.broadcast %cst_29 : f32 to vector<16x32xf32>
    %44 = arith.maximumf %42, %43 : vector<16x32xf32>
    %45 = arith.extf %4 : vector<1x32xbf16> to vector<1x32xf32>
    %46 = vector.broadcast %45 : vector<1x32xf32> to vector<16x32xf32>
    %47 = arith.mulf %44, %46 : vector<16x32xf32>
    %cst_30 = arith.constant dense<0.000000e+00> : vector<16xf32>
    %48 = vector.multi_reduction <add>, %47, %cst_30 [1] : vector<16x32xf32> to vector<16xf32>
    %49 = vector.shape_cast %48 : vector<16xf32> to vector<16x1xf32>
    %50 = vector.broadcast %5 : vector<1x1xf32> to vector<16x1xf32>
    %51 = arith.addf %49, %50 : vector<16x1xf32>
    %52 = vector.broadcast %51 : vector<16x1xf32> to vector<16x64xf32>
    %53 = arith.mulf %38, %52 : vector<16x64xf32>
    %c4 = arith.constant 4 : index
    %c0_31 = arith.constant 0 : index
    %c0_32 = arith.constant 0 : index
    %54 = vector.load %arg1[%c4, %c0_31, %c0_32] : memref<8x16x128xbf16, #tpu.memory_space<vmem>>, vector<1x16x128xbf16>
    %55 = vector.shape_cast %54 : vector<1x16x128xbf16> to vector<16x128xbf16>
    %cst_33 = arith.constant dense<0.000000e+00> : vector<16x64xf32>
    %56 = tpu.matmul %55, %0, %cst_33 {dimension_numbers = #tpu.dot_dimension_numbers<[1], [0], [0], [1], [0, 0, 1, 1], [], []>} : vector<16x128xbf16>, vector<128x64xbf16>, vector<16x64xf32> -> vector<16x64xf32>
    %57 = vector.broadcast %1 : vector<1x64xf32> to vector<16x64xf32>
    %58 = arith.addf %56, %57 : vector<16x64xf32>
    %cst_34 = arith.constant 0.000000e+00 : f32
    %59 = vector.broadcast %cst_34 : f32 to vector<16x64xf32>
    %60 = arith.maximumf %58, %59 : vector<16x64xf32>
    %c5 = arith.constant 5 : index
    %c0_35 = arith.constant 0 : index
    %c0_36 = arith.constant 0 : index
    %61 = vector.load %arg1[%c5, %c0_35, %c0_36] : memref<8x16x128xbf16, #tpu.memory_space<vmem>>, vector<1x16x128xbf16>
    %62 = vector.shape_cast %61 : vector<1x16x128xbf16> to vector<16x128xbf16>
    %cst_37 = arith.constant dense<0.000000e+00> : vector<16x64xf32>
    %63 = tpu.matmul %62, %0, %cst_37 {dimension_numbers = #tpu.dot_dimension_numbers<[1], [0], [0], [1], [0, 0, 1, 1], [], []>} : vector<16x128xbf16>, vector<128x64xbf16>, vector<16x64xf32> -> vector<16x64xf32>
    %64 = vector.broadcast %1 : vector<1x64xf32> to vector<16x64xf32>
    %65 = arith.addf %63, %64 : vector<16x64xf32>
    %cst_38 = arith.constant 0.000000e+00 : f32
    %66 = vector.broadcast %cst_38 : f32 to vector<16x64xf32>
    %67 = arith.maximumf %65, %66 : vector<16x64xf32>
    %68 = arith.addf %60, %67 : vector<16x64xf32>
    %c6 = arith.constant 6 : index
    %c0_39 = arith.constant 0 : index
    %c0_40 = arith.constant 0 : index
    %69 = vector.load %arg1[%c6, %c0_39, %c0_40] : memref<8x16x128xbf16, #tpu.memory_space<vmem>>, vector<1x16x128xbf16>
    %70 = vector.shape_cast %69 : vector<1x16x128xbf16> to vector<16x128xbf16>
    %cst_41 = arith.constant dense<0.000000e+00> : vector<16x64xf32>
    %71 = tpu.matmul %70, %0, %cst_41 {dimension_numbers = #tpu.dot_dimension_numbers<[1], [0], [0], [1], [0, 0, 1, 1], [], []>} : vector<16x128xbf16>, vector<128x64xbf16>, vector<16x64xf32> -> vector<16x64xf32>
    %72 = vector.broadcast %1 : vector<1x64xf32> to vector<16x64xf32>
    %73 = arith.addf %71, %72 : vector<16x64xf32>
    %cst_42 = arith.constant 0.000000e+00 : f32
    %74 = vector.broadcast %cst_42 : f32 to vector<16x64xf32>
    %75 = arith.maximumf %73, %74 : vector<16x64xf32>
    %76 = arith.addf %68, %75 : vector<16x64xf32>
    %c7 = arith.constant 7 : index
    %c0_43 = arith.constant 0 : index
    %c0_44 = arith.constant 0 : index
    %77 = vector.load %arg1[%c7, %c0_43, %c0_44] : memref<8x16x128xbf16, #tpu.memory_space<vmem>>, vector<1x16x128xbf16>
    %78 = vector.shape_cast %77 : vector<1x16x128xbf16> to vector<16x128xbf16>
    %cst_45 = arith.constant dense<0.000000e+00> : vector<16x64xf32>
    %79 = tpu.matmul %78, %0, %cst_45 {dimension_numbers = #tpu.dot_dimension_numbers<[1], [0], [0], [1], [0, 0, 1, 1], [], []>} : vector<16x128xbf16>, vector<128x64xbf16>, vector<16x64xf32> -> vector<16x64xf32>
    %80 = vector.broadcast %1 : vector<1x64xf32> to vector<16x64xf32>
    %81 = arith.addf %79, %80 : vector<16x64xf32>
    %cst_46 = arith.constant 0.000000e+00 : f32
    %82 = vector.broadcast %cst_46 : f32 to vector<16x64xf32>
    %83 = arith.maximumf %81, %82 : vector<16x64xf32>
    %84 = arith.addf %76, %83 : vector<16x64xf32>
    %cst_47 = arith.constant 2.500000e-01 : f32
    %85 = vector.broadcast %cst_47 : f32 to vector<16x64xf32>
    %86 = arith.mulf %84, %85 : vector<16x64xf32>
    %87 = arith.truncf %86 : vector<16x64xf32> to vector<16x64xbf16>
    %cst_48 = arith.constant dense<0.000000e+00> : vector<16x32xf32>
    %88 = tpu.matmul %87, %2, %cst_48 {dimension_numbers = #tpu.dot_dimension_numbers<[1], [0], [0], [1], [0, 0, 1, 1], [], []>} : vector<16x64xbf16>, vector<64x32xbf16>, vector<16x32xf32> -> vector<16x32xf32>
    %89 = vector.broadcast %3 : vector<1x32xf32> to vector<16x32xf32>
    %90 = arith.addf %88, %89 : vector<16x32xf32>
    %cst_49 = arith.constant 0.000000e+00 : f32
    %91 = vector.broadcast %cst_49 : f32 to vector<16x32xf32>
    %92 = arith.maximumf %90, %91 : vector<16x32xf32>
    %93 = arith.extf %4 : vector<1x32xbf16> to vector<1x32xf32>
    %94 = vector.broadcast %93 : vector<1x32xf32> to vector<16x32xf32>
    %95 = arith.mulf %92, %94 : vector<16x32xf32>
    %cst_50 = arith.constant dense<0.000000e+00> : vector<16xf32>
    %96 = vector.multi_reduction <add>, %95, %cst_50 [1] : vector<16x32xf32> to vector<16xf32>
    %97 = vector.shape_cast %96 : vector<16xf32> to vector<16x1xf32>
    %98 = vector.broadcast %5 : vector<1x1xf32> to vector<16x1xf32>
    %99 = arith.addf %97, %98 : vector<16x1xf32>
    %100 = vector.broadcast %99 : vector<16x1xf32> to vector<16x64xf32>
    %101 = arith.mulf %86, %100 : vector<16x64xf32>
    %102 = arith.addf %53, %101 : vector<16x64xf32>
    %103 = arith.truncf %102 : vector<16x64xf32> to vector<16x64xbf16>
    %c0_51 = arith.constant 0 : index
    %c0_52 = arith.constant 0 : index
    %104 = vector.load %arg8[%c0_51, %c0_52] : memref<16x64xbf16, #tpu.memory_space<vmem>>, vector<16x64xbf16>
    tpu.vector_store %arg8[%c0_51, %c0_52], %103 {strides = array<i32>} : memref<16x64xbf16, #tpu.memory_space<vmem>>, vector<16x64xbf16>,
    return
  }
  func.func @transform_0(%arg0: i32) -> (i32, i32, i32) {
    %c0_i32 = arith.constant 0 : i32
    %c0_i32_0 = arith.constant 0 : i32
    %c0_i32_1 = arith.constant 0 : i32
    return %c0_i32, %arg0, %c0_i32_0 : i32, i32, i32
  }
  func.func @transform_1(%arg0: i32) -> (i32, i32) {
    %c0_i32 = arith.constant 0 : i32
    %c0_i32_0 = arith.constant 0 : i32
    %c0_i32_1 = arith.constant 0 : i32
    return %c0_i32, %c0_i32_0 : i32, i32
  }
  func.func @transform_2(%arg0: i32) -> (i32, i32) {
    %c0_i32 = arith.constant 0 : i32
    %c0_i32_0 = arith.constant 0 : i32
    %c0_i32_1 = arith.constant 0 : i32
    return %c0_i32, %c0_i32_0 : i32, i32
  }
  func.func @transform_3(%arg0: i32) -> (i32, i32) {
    %c0_i32 = arith.constant 0 : i32
    %c0_i32_0 = arith.constant 0 : i32
    %c0_i32_1 = arith.constant 0 : i32
    return %c0_i32, %c0_i32_0 : i32, i32
  }
  func.func @transform_4(%arg0: i32) -> (i32, i32) {
    %c0_i32 = arith.constant 0 : i32
    %c0_i32_0 = arith.constant 0 : i32
    %c0_i32_1 = arith.constant 0 : i32
    return %c0_i32, %c0_i32_0 : i32, i32
  }
  func.func @transform_5(%arg0: i32) -> (i32, i32) {
    %c0_i32 = arith.constant 0 : i32
    %c0_i32_0 = arith.constant 0 : i32
    %c0_i32_1 = arith.constant 0 : i32
    return %c0_i32, %c0_i32_0 : i32, i32
  }
  func.func @transform_6(%arg0: i32) -> (i32, i32) {
    %c0_i32 = arith.constant 0 : i32
    %c0_i32_0 = arith.constant 0 : i32
    %c0_i32_1 = arith.constant 0 : i32
    return %c0_i32, %c0_i32_0 : i32, i32
  }
  func.func @transform_7(%arg0: i32) -> (i32, i32) {
    %c0_i32 = arith.constant 0 : i32
    %c0_i32_0 = arith.constant 0 : i32
    return %arg0, %c0_i32 : i32, i32
  }
}

module attributes {stable_mosaic.version = 11 : i64} {
  func.func @_tail_kernel(%arg0: memref<16x64xbf16, #tpu.memory_space<vmem>>, %arg1: memref<64x32xbf16, #tpu.memory_space<vmem>>, %arg2: memref<1x32xf32, #tpu.memory_space<vmem>>, %arg3: memref<1x32xbf16, #tpu.memory_space<vmem>>, %arg4: memref<1x1xf32, #tpu.memory_space<vmem>>, %arg5: memref<64x32xbf16, #tpu.memory_space<vmem>>, %arg6: memref<1x32xf32, #tpu.memory_space<vmem>>, %arg7: memref<32x2xbf16, #tpu.memory_space<vmem>>, %arg8: memref<1x2xf32, #tpu.memory_space<vmem>>, %arg9: memref<1x2xf32, #tpu.memory_space<vmem>>) attributes {dimension_semantics = [], scalar_prefetch = 0 : i64, scratch_operands = 0 : i64, tpu.core_type = #tpu.core_type<tc>} {
    %c0 = arith.constant 0 : index
    %c0_0 = arith.constant 0 : index
    %0 = vector.load %arg0[%c0, %c0_0] : memref<16x64xbf16, #tpu.memory_space<vmem>>, vector<16x64xbf16>
    %1 = arith.extf %0 : vector<16x64xbf16> to vector<16x64xf32>
    %c0_1 = arith.constant 0 : index
    %c0_2 = arith.constant 0 : index
    %2 = vector.load %arg1[%c0_1, %c0_2] : memref<64x32xbf16, #tpu.memory_space<vmem>>, vector<64x32xbf16>
    %cst = arith.constant dense<0.000000e+00> : vector<16x32xf32>
    %3 = tpu.matmul %0, %2, %cst {dimension_numbers = #tpu.dot_dimension_numbers<[1], [0], [0], [1], [0, 0, 1, 1], [], []>} : vector<16x64xbf16>, vector<64x32xbf16>, vector<16x32xf32> -> vector<16x32xf32>
    %c0_3 = arith.constant 0 : index
    %c0_4 = arith.constant 0 : index
    %4 = vector.load %arg2[%c0_3, %c0_4] : memref<1x32xf32, #tpu.memory_space<vmem>>, vector<1x32xf32>
    %5 = vector.broadcast %4 : vector<1x32xf32> to vector<16x32xf32>
    %6 = arith.addf %3, %5 : vector<16x32xf32>
    %7 = math.tanh %6 : vector<16x32xf32>
    %c0_5 = arith.constant 0 : index
    %c0_6 = arith.constant 0 : index
    %8 = vector.load %arg3[%c0_5, %c0_6] : memref<1x32xbf16, #tpu.memory_space<vmem>>, vector<1x32xbf16>
    %9 = arith.extf %8 : vector<1x32xbf16> to vector<1x32xf32>
    %10 = vector.broadcast %9 : vector<1x32xf32> to vector<16x32xf32>
    %11 = arith.mulf %7, %10 : vector<16x32xf32>
    %cst_7 = arith.constant dense<0.000000e+00> : vector<16xf32>
    %12 = vector.multi_reduction <add>, %11, %cst_7 [1] : vector<16x32xf32> to vector<16xf32>
    %13 = vector.shape_cast %12 : vector<16xf32> to vector<16x1xf32>
    %c0_8 = arith.constant 0 : index
    %c0_9 = arith.constant 0 : index
    %14 = vector.load %arg4[%c0_8, %c0_9] : memref<1x1xf32, #tpu.memory_space<vmem>>, vector<1x1xf32>
    %15 = vector.broadcast %14 : vector<1x1xf32> to vector<16x1xf32>
    %16 = arith.addf %13, %15 : vector<16x1xf32>
    %cst_10 = arith.constant dense<0xFF800000> : vector<1xf32>
    %17 = vector.multi_reduction <maximumf>, %16, %cst_10 [0] : vector<16x1xf32> to vector<1xf32>
    %18 = vector.shape_cast %17 : vector<1xf32> to vector<1x1xf32>
    %19 = vector.broadcast %18 : vector<1x1xf32> to vector<16x1xf32>
    %20 = arith.subf %16, %19 : vector<16x1xf32>
    %21 = math.exp %20 : vector<16x1xf32>
    %cst_11 = arith.constant dense<0.000000e+00> : vector<1xf32>
    %22 = vector.multi_reduction <add>, %21, %cst_11 [0] : vector<16x1xf32> to vector<1xf32>
    %23 = vector.shape_cast %22 : vector<1xf32> to vector<1x1xf32>
    %24 = vector.broadcast %23 : vector<1x1xf32> to vector<16x1xf32>
    %25 = arith.divf %21, %24 : vector<16x1xf32>
    %26 = vector.broadcast %25 : vector<16x1xf32> to vector<16x64xf32>
    %27 = arith.mulf %26, %1 : vector<16x64xf32>
    %cst_12 = arith.constant dense<0.000000e+00> : vector<64xf32>
    %28 = vector.multi_reduction <add>, %27, %cst_12 [0] : vector<16x64xf32> to vector<64xf32>
    %29 = vector.shape_cast %28 : vector<64xf32> to vector<1x64xf32>
    %30 = arith.truncf %29 : vector<1x64xf32> to vector<1x64xbf16>
    %c0_13 = arith.constant 0 : index
    %c0_14 = arith.constant 0 : index
    %31 = vector.load %arg5[%c0_13, %c0_14] : memref<64x32xbf16, #tpu.memory_space<vmem>>, vector<64x32xbf16>
    %cst_15 = arith.constant dense<0.000000e+00> : vector<1x32xf32>
    %32 = tpu.matmul %30, %31, %cst_15 {dimension_numbers = #tpu.dot_dimension_numbers<[1], [0], [0], [1], [0, 0, 1, 1], [], []>} : vector<1x64xbf16>, vector<64x32xbf16>, vector<1x32xf32> -> vector<1x32xf32>
    %c0_16 = arith.constant 0 : index
    %c0_17 = arith.constant 0 : index
    %33 = vector.load %arg6[%c0_16, %c0_17] : memref<1x32xf32, #tpu.memory_space<vmem>>, vector<1x32xf32>
    %34 = arith.addf %32, %33 : vector<1x32xf32>
    %cst_18 = arith.constant 0.000000e+00 : f32
    %35 = vector.broadcast %cst_18 : f32 to vector<1x32xf32>
    %36 = arith.maximumf %34, %35 : vector<1x32xf32>
    %37 = arith.truncf %36 : vector<1x32xf32> to vector<1x32xbf16>
    %c0_19 = arith.constant 0 : index
    %c0_20 = arith.constant 0 : index
    %38 = vector.load %arg7[%c0_19, %c0_20] : memref<32x2xbf16, #tpu.memory_space<vmem>>, vector<32x2xbf16>
    %cst_21 = arith.constant dense<0.000000e+00> : vector<1x2xf32>
    %39 = tpu.matmul %37, %38, %cst_21 {dimension_numbers = #tpu.dot_dimension_numbers<[1], [0], [0], [1], [0, 0, 1, 1], [], []>} : vector<1x32xbf16>, vector<32x2xbf16>, vector<1x2xf32> -> vector<1x2xf32>
    %c0_22 = arith.constant 0 : index
    %c0_23 = arith.constant 0 : index
    %40 = vector.load %arg8[%c0_22, %c0_23] : memref<1x2xf32, #tpu.memory_space<vmem>>, vector<1x2xf32>
    %41 = arith.addf %39, %40 : vector<1x2xf32>
    %c0_24 = arith.constant 0 : index
    %c0_25 = arith.constant 0 : index
    %42 = vector.load %arg9[%c0_24, %c0_25] : memref<1x2xf32, #tpu.memory_space<vmem>>, vector<1x2xf32>
    tpu.vector_store %arg9[%c0_24, %c0_25], %41 {strides = array<i32>} : memref<1x2xf32, #tpu.memory_space<vmem>>, vector<1x2xf32>,
    return
  }
}

</mosaic_0001>

<bundles_post_ra>
// kernel: csmil_forward.3
= control target key start
LH: loop header
LB: loop body
LE: loop exit
PB: predicated region body
PF: predicated region fallthrough
CT: control target
= control target key end

     0   :  { %s618_s0 = inlined_call_operand.vmem [shape: bf16[16,64], index: 0, kind: input, shape index: {}]   ;;  %s619_s1 = inlined_call_operand.vmem [shape: bf16[64,32], index: 1, kind: input, shape index: {}]   ;;  %s620_s2 = inlined_call_operand.vmem [shape: f32[1,32], index: 2, kind: input, shape index: {}]   ;;  %s621_s3 = inlined_call_operand.vmem [shape: bf16[1,32], index: 3, kind: input, shape index: {}]   ;;  %s622_s4 = inlined_call_operand.<no memory space> [shape: f32[1,1], index: 4, kind: input, shape index: {}]   ;;  %s623_s5 = inlined_call_operand.vmem [shape: bf16[64,32], index: 5, kind: input, shape index: {}]   ;;  %s624_s6 = inlined_call_operand.vmem [shape: f32[1,32], index: 6, kind: input, shape index: {}]   ;;  %s625_s7 = inlined_call_operand.vmem [shape: bf16[32,2], index: 7, kind: input, shape index: {}]   ;;  %s626_s8 = inlined_call_operand.vmem [shape: f32[1,2], index: 8, kind: input, shape index: {}]   ;;  %s627_s9 = inlined_call_operand.hbm [shape: f32[1,2], index: 9, kind: output, shape index: {}]  }
   0x1   :  { %v14_v0 = vstv %s622_s4 }
   0x2   :  { %15 = vst [vmem:[#allocation2] sm:$0x1] %v14_v0 }
   0x3   :  { %v426_v1 = vld [vmem:[%s619_s1] sm:$0xff]   ;;  %v472_v2 = vmov 0.0   ;;  %v427_v3 = vld [vmem:[%s619_s1 + $0x8] sm:$0xff]   ;;  %vm473_vm0 = vmmov 0   ;;  %v428_v4 = vld [vmem:[%s619_s1 + $0x10] sm:$0xff]  }
   0x4   :  { %388 = vmatprep.subr.bf16.mxu0 %v472_v2  ;;  %400 = vmatprep.subr.bf16.mxu1 %v472_v2 }
   0x5   :  { %389 = vmatpush3.bf16.msra.mxu0 %v426_v1  ;;  %396 = vmatprep.mubr.msk.bf16.mxu0 %vm473_vm0, %v472_v2 }
   0x6   :  { %390 = vmatprep.subr.bf16.mxu0 %v472_v2  ;;  %408 = vmatprep.mubr.msk.bf16.mxu1 %vm473_vm0, %v472_v2 }
   0x9   :  { %391 = vmatpush3.bf16.msra.mxu0 %v427_v3 }
   0xa   :  { %392 = vmatprep.subr.bf16.mxu0 %v472_v2 }
   0xb   :  { %16 = vsyncpa [#allocation4], 0  ;;  %v429_v5 = vld [vmem:[%s619_s1 + $0x18] sm:$0xff]   ;;  %v552_v6 = vld [vmem:[%s618_s0] sm:$0xff]   ;;  %vm84_vm1 = vcmask 523264   ;;  %v133_v8 = vlaneseq  ;;  %vm139_vm2 = vcmask 261120  }
   0xc   :  { %v359_v7 = vld [vmem:[%s620_s2] ss:$0 sm:$0xff]  ;;  %v474_v26 = vmov 0   ;;  %vm155_vm3 = vcmask 7168   ;;  %v432_v60 = vld [vmem:[%s623_s5 + $0x8] sm:$0xff]   ;;  %v433_v61 = vld [vmem:[%s623_s5 + $0x10] sm:$0xff]   ;;  %v38_v0 = vunpack.c.l.bf16 %v552_v6  ;;  %v39_v3 = vunpack.c.h.bf16 %v552_v6 }
   0xd   :  { %393 = vmatpush3.bf16.msra.mxu0 %v428_v4  ;;  %v134_v13 = vshrl.u32 %v133_v8, 7  ;;  %v131_v16 = vld [vmem:[%s621_s3] sm:$0x1]  ;;  %424 = vset.pattern.permute.xlu1 %v474_v26  ;;  %v434_v62 = vld [vmem:[%s623_s5 + $0x18] sm:$0xff]   ;;  %s475_s14 = smov [#allocation3]   ;;  %vm343_vm4 = vcmask 8192  }
   0xe   :  { %394 = vmatprep.subr.bf16.mxu0 %v472_v2  ;;  %v132_v17 = vunpack.c.l.bf16 %v131_v16  ;;  %425 = vset.pattern.permute.xlu0 %v474_v26  ;;  %v366_v27 = vld [vmem:[#allocation2] ss:$0 sm:$0xff] }
   0xf   :  { %v135_v18 = vsub.s32 0, %v134_v13  ;;  %v431_v59 = vld [vmem:[%s623_s5] sm:$0xff]  }
  0x10   :  { %401 = vmatpush3.bf16.msra.mxu1 %v431_v59  ;;  %v435_v63 = vld [vmem:[%s625_s7] sm:$0xff]  }
  0x11   :  { %395 = vmatpush3.bf16.msra.mxu0 %v429_v5  ;;  %v136_v19 = vrot.slane %v132_v17, %v135_v18  ;;  %402 = vmatprep.subr.bf16.mxu1 %v472_v2  ;;  %v213_v17 = vld [vmem:[%s624_s6] sm:$0x1] }
  0x12   :  { %412 = vmatprep.subr.bf16.mxu0 %v472_v2 }
  0x14   :  { %397 = vmatmul.mubr.msk.bf16.vlgmr.msra.gmra.mrb[0].mxu0 %vm84_vm1, %v552_v6  ;;  %403 = vmatpush3.bf16.msra.mxu1 %v432_v60  ;;  %v436_v6 = vld [vmem:[%s625_s7 + $0x8] sm:$0xff]   ;;  %s351_s7 = sshll.u32 %s475_s14, 4  ;;  %s352_s7 = int_to_ptr.vmem [resolvable:$true] %s351_s7 }
  0x15   :  { %416 = vmatprep.mubr.msk.bf16.mxu0 %vm473_vm0, %v472_v2  ;;  %404 = vmatprep.subr.bf16.mxu1 %v472_v2  ;;  %s448_s6 = scalar_lea.vmem %s352_s7, 16  ;;  %s452_s4 = scalar_lea.vmem %s352_s7, 32 }
  0x16   :  { %413 = vmatpush3.bf16.msra.mxu0 %v435_v63  ;;  %p449_p0 = scmp.ne.s32.totalorder %s352_s7, %s448_s6  ;;  %p453_p1 = scmp.lt.s32.totalorder %s352_s7, %s352_s7 }
  0x17   :  { %414 = vmatprep.subr.bf16.mxu0 %v472_v2  ;;  %p454_p2 = scmp.lt.s32.totalorder %s452_s4, %s448_s6 }
  0x18   :  { %405 = vmatpush3.bf16.msra.mxu1 %v433_v61 }
  0x19   :  { %406 = vmatprep.subr.bf16.mxu1 %v472_v2  ;;  %p455_p3 = por %p454_p2, %p453_p1 }
  0x1a   :  { %415 = vmatpush3.bf16.msra.mxu0 %v436_v6 }
  0x1b   :  { %p456_p4 = pnand %p455_p3, %p449_p0 }
  0x1c   :  { %407 = vmatpush3.bf16.msra.mxu1 %v434_v62 }
  0xe7   :  { %v122_v9 = vpop.f32.mrb[0].mxu0 }
  0xe8   :  { %v123_v10 = vadd.f32 %v359_v7, %v122_v9  ;;  %v398_v11 = vpop.f32.mrb[1].mxu0 }
  0xe9   :  { %v125_v12 = vpop.f32.mrb[2].mxu0 }
  0xea   :  { %438 = vtanh.f32 %v123_v10  ;;  %v126_v14 = vadd.f32 %v359_v7, %v125_v12  ;;  %v399_v15 = vpop.f32.mrb[3].mxu0 }
  0xec   :  { %440 = vtanh.f32 %v126_v14 }
  0xf4   :  { %v439_v20 = vpop.eup %438 }
  0xf5   :  { %v137_v21 = vmul.f32 %v439_v20, %v136_v19 }
  0xf6   :  { %v441_v22 = vpop.eup %440 }
  0xf7   :  { %v140_v23 = vsel %vm139_vm2, %v137_v21, 0.0  ;;  %v138_v24 = vmul.f32 %v441_v22, %v136_v19 }
  0xf8   :  { %141 = vadd.xlane.f32.xlu0 %v140_v23 }
  0xf9   :  { %v143_v25 = vsel %vm139_vm2, %v138_v24, 0.0 }
  0xfc   :  { %144 = vadd.xlane.f32.xlu0 %v143_v25  ;;  %v287_v25 = vld [vmem:[%s626_s8] sm:$0x1] }
 0x185   :  { %v142_v28 = vpop.xlane.xlu0 %141 }
 0x186   :  { %v153_v29 = vadd.f32 %v366_v27, %v142_v28 }
 0x188   :  { %v156_v32 = vsel %vm155_vm3, %v153_v29, -inf }
 0x189   :  { %v145_v30 = vpop.xlane.xlu0 %144 }
 0x18a   :  { %v154_v31 = vadd.f32 %v366_v27, %v145_v30 }
 0x18c   :  { %v157_v33 = vsel %vm155_vm3, %v154_v31, -inf }
 0x18d   :  { %v158_v34 = vmax.f32 %v156_v32, %v157_v33 }
 0x18f   :  { %v159_v35 = vrot.slane %v158_v34, 4 }
 0x191   :  { %v160_v36 = vmax.f32 %v158_v34, %v159_v35 }
 0x193   :  { %v161_v37 = vrot.slane %v160_v36, 2 }
 0x195   :  { %v162_v38 = vmax.f32 %v160_v36, %v161_v37 }
 0x197   :  { %v163_v39 = vrot.slane %v162_v38, 1 }
 0x199   :  { %v164_v40 = vmax.f32 %v162_v38, %v163_v39 }
 0x19b   :  { %v165_v41 = vsub.f32 %v153_v29, %v164_v40  ;;  %v166_v42 = vsub.f32 %v154_v31, %v164_v40 }
 0x19d   :  { %v167_v43 = vmul.f32 1.442695, %v165_v41  ;;  %v169_v44 = vmul.f32 1.442695, %v166_v42 }
 0x19f   :  { %442 = vpow2.f32 %v167_v43 }
 0x1a0   :  { %444 = vpow2.f32 %v169_v44 }
 0x1a9   :  { %v443_v45 = vpop.eup %442 }
 0x1aa   :  { %v445_v46 = vpop.eup %444  ;;  %v171_v47 = vsel %vm155_vm3, %v443_v45, 0.0 }
 0x1ab   :  { %v172_v48 = vsel %vm155_vm3, %v445_v46, 0.0 }
 0x1ac   :  { %v173_v49 = vadd.f32 %v172_v48, %v171_v47 }
 0x1ae   :  { %v174_v50 = vrot.slane %v173_v49, 4 }
 0x1b0   :  { %v175_v51 = vadd.f32 %v174_v50, %v173_v49 }
 0x1b2   :  { %v176_v52 = vrot.slane %v175_v51, 2 }
 0x1b4   :  { %v177_v53 = vadd.f32 %v176_v52, %v175_v51 }
 0x1b6   :  { %v178_v54 = vrot.slane %v177_v53, 1 }
 0x1b8   :  { %v179_v55 = vadd.f32 %v178_v54, %v177_v53 }
 0x1ba   :  { %446 = vrcp.f32 %v179_v55 }
 0x1c4   :  { %v447_v56 = vpop.eup %446 }
 0x1c5   :  { %v181_v57 = vmul.f32 %v447_v56, %v443_v45  ;;  %v182_v58 = vmul.f32 %v447_v56, %v445_v46 }
 0x1c7   :  { %185 = vperm.xlu1 %424, %v181_v57  }
 0x1cb   :  { %190 = vperm.xlu1 %424, %v182_v58  }
 0x246   :  { %v186_v1 = vpop.permute.xlu1 %185 }
 0x247   :  { %v193_v4 = vmul.f32 %v186_v1, %v38_v0 }
 0x249   :  { %v195_v8 = vsel %vm84_vm1, %v193_v4, 0.0 }
 0x24a   :  { %v191_v5 = vpop.permute.xlu1 %190 }
 0x24b   :  { %v194_v7 = vmul.f32 %v191_v5, %v39_v3 }
 0x24d   :  { %v196_v9 = vsel %vm84_vm1, %v194_v7, 0.0 }
 0x24e   :  { %v197_v10 = vadd.f32 %v196_v9, %v195_v8 }
 0x250   :  { %v198_v11 = vrot.slane %v197_v10, 4 }
 0x252   :  { %v199_v12 = vadd.f32 %v198_v11, %v197_v10 }
 0x254   :  { %v200_v13 = vrot.slane %v199_v12, 2 }
 0x256   :  { %v201_v14 = vadd.f32 %v200_v13, %v199_v12 }
 0x258   :  { %v202_v15 = vrot.slane %v201_v14, 1 }
 0x25a   :  { %v203_v16 = vadd.f32 %v202_v15, %v201_v14 }
 0x25c   :  { %v204_v2 = vpack.c.bf16 %v203_v16, %v203_v16 }
 0x25e   :  { %409 = vmatmul.mubr.msk.bf16.vlgmr.msra.gmra.mrb[0].mxu1 %vm84_vm1, %v204_v2 }
 0x331   :  { %v275_v18 = vpop.f32.mrb[0].mxu1 }
 0x332   :  { %v276_v19 = vadd.f32 %v275_v18, %v213_v17  ;;  %v410_v20 = vpop.f32.mrb[1].mxu1 }
 0x333   :  { %v278_v21 = vpop.f32.mrb[2].mxu1 }
 0x334   :  { %v281_v22 = vmax.f32 %v276_v19, 0.0  ;;  %v411_v23 = vpop.f32.mrb[3].mxu1 }
 0x336   :  { %v282_v24 = vpack.c.bf16 %v281_v22, %v281_v22 }
 0x338   :  { %417 = vmatmul.mubr.msk.bf16.vlgmr.msra.gmra.mrb[4].mxu0 %vm139_vm2, %v282_v24 }
 0x40b   :  { %v337_v26 = vpop.f32.mrb[4].mxu0 }
 0x40c   :  { %v338_v27 = vadd.f32 %v337_v26, %v287_v25  ;;  %v418_v28 = vpop.f32.mrb[5].mxu0 }
 0x40d   :  { %v340_v29 = vpop.f32.mrb[6].mxu0 }
 0x40e   :  { %v419_v30 = vpop.f32.mrb[7].mxu0  ;;  %344 = vst.msk [vmem:[#allocation3] sm:$0x1] %vm343_vm4, %v338_v27 }
 0x40f   :  { %459 = shalt.err (!%p456_p4)
}
 0x410   :  { %s460_s16 = scalar_lea.hbm %s627_s9, 16 }
 0x411   :  { %p461_p5 = scmp.ne.s32.totalorder %s627_s9, %s460_s16  ;;  %p464_p6 = scmp.lt.u32.totalorder %s460_s16, %s627_s9 }
 0x413   :  { %p466_p7 = pnand %p464_p6, %p461_p5 }
 0x415   :  { %469 = shalt.err (!%p466_p7)
}
 0x416   :  { %354 = dma.vmem_to_hbm [thread:$0]  %s352_s7, 16, %s627_s9, [#allocation4]  }
 0x417   :  { %470 = dma.done.wait [#allocation4], 16  }
 0x418   :  { %471 = vsyncadd [#allocation4], 4294967280 }
 0x419   :  { %358 = vsyncpa [#allocation4], 1 }

// kernel: csmil_forward.2
= control target key start
LH: loop header
LB: loop body
LE: loop exit
PB: predicated region body
PF: predicated region fallthrough
CT: control target
= control target key end

     0   :  { %v1074_v0 = vmov 0.0   ;;  %vm1075_vm0 = vmmov 0   ;;  %vm357_vm1 = vcmask 523264   ;;  %vm411_vm2 = vcmask 261120   ;;  %s1411_s1 = inlined_call_operand.vmem [shape: bf16[128,64], index: 1, kind: input, shape index: {}]   ;;  %s1412_s0 = inlined_call_operand.vmem [shape: bf16[8,16,128], index: 0, kind: input, shape index: {}]   ;;  %s1413_s3 = inlined_call_operand.vmem [shape: bf16[64,32], index: 3, kind: input, shape index: {}]   ;;  %s1414_s2 = inlined_call_operand.vmem [shape: f32[1,64], index: 2, kind: input, shape index: {}]   ;;  %s1415_s6 = inlined_call_operand.<no memory space> [shape: f32[1,1], index: 6, kind: input, shape index: {}]   ;;  %s1416_s5 = inlined_call_operand.vmem [shape: bf16[1,32], index: 5, kind: input, shape index: {}]   ;;  %s1417_s4 = inlined_call_operand.vmem [shape: f32[1,32], index: 4, kind: input, shape index: {}]   ;;  %s1418_s7 = inlined_call_operand.vmem [shape: bf16[16,64], index: 7, kind: output, shape index: {}]  }
   0x1   :  { %865 = vmatprep.subr.bf16.mxu0 %v1074_v0  ;;  %885 = vmatprep.subr.bf16.mxu1 %v1074_v0  ;;  %v1122_v1 = vld [vmem:[%s1411_s1] sm:$0xff]   ;;  %v1133_v2 = vld [vmem:[%s1411_s1 + $0x8] sm:$0xff]   ;;  %v1142_v3 = vld [vmem:[%s1411_s1 + $0x10] sm:$0xff]   ;;  %vm733_vm3 = vcmask 519168  }
   0x2   :  { %881 = vmatprep.mubr.msk.bf16.mxu0 %vm1075_vm0, %v1074_v0  ;;  %901 = vmatprep.mubr.msk.bf16.mxu1 %vm1075_vm0, %v1074_v0  ;;  %v1151_v4 = vld [vmem:[%s1411_s1 + $0x18] sm:$0xff]   ;;  %v1158_v5 = vld [vmem:[%s1411_s1 + $0x20] sm:$0xff]   ;;  %v1169_v6 = vld [vmem:[%s1411_s1 + $0x28] sm:$0xff]  }
   0x3   :  { %866 = vmatpush3.bf16.msra.mxu0 %v1122_v1  ;;  %886 = vmatpush3.bf16.msra.mxu1 %v1122_v1  ;;  %v1178_v7 = vld [vmem:[%s1411_s1 + $0x30] sm:$0xff]   ;;  %v1187_v8 = vld [vmem:[%s1411_s1 + $0x38] sm:$0xff]   ;;  %v1062_v9 = vld [vmem:[%s1412_s0] sm:$0xff]  }
   0x4   :  { %867 = vmatprep.subr.bf16.mxu0 %v1074_v0  ;;  %887 = vmatprep.subr.bf16.mxu1 %v1074_v0  ;;  %v1063_v10 = vld [vmem:[%s1412_s0 + $0x8] sm:$0xff]   ;;  %v1064_v11 = vld [vmem:[%s1412_s0 + $0x10] sm:$0xff]   ;;  %v1065_v12 = vld [vmem:[%s1412_s0 + $0x18] sm:$0xff]  }
   0x5   :  { %v1066_v13 = vld [vmem:[%s1413_s3] sm:$0xff]   ;;  %v1067_v14 = vld [vmem:[%s1413_s3 + $0x8] sm:$0xff]   ;;  %v1068_v15 = vld [vmem:[%s1413_s3 + $0x10] sm:$0xff]  }
   0x6   :  { %v1069_v16 = vld [vmem:[%s1413_s3 + $0x18] sm:$0xff]   ;;  %v1070_v17 = vld [vmem:[%s1412_s0 + $0x20] sm:$0xff]   ;;  %v1072_v18 = vld [vmem:[%s1412_s0 + $0x30] sm:$0xff]  }
   0x7   :  { %868 = vmatpush3.bf16.msra.mxu0 %v1133_v2  ;;  %888 = vmatpush3.bf16.msra.mxu1 %v1133_v2  ;;  %v1311_v19 = vld [vmem:[%s1414_s2] ss:$0 sm:$0xff]  ;;  %v1071_v61 = vld [vmem:[%s1412_s0 + $0x28] sm:$0xff]   ;;  %v1073_v62 = vld [vmem:[%s1412_s0 + $0x38] sm:$0xff]  }
   0x8   :  { %869 = vmatprep.subr.bf16.mxu0 %v1074_v0  ;;  %889 = vmatprep.subr.bf16.mxu1 %v1074_v0 }
   0xb   :  { %870 = vmatpush3.bf16.msra.mxu0 %v1142_v3  ;;  %890 = vmatpush3.bf16.msra.mxu1 %v1142_v3 }
   0xc   :  { %871 = vmatprep.subr.bf16.mxu0 %v1074_v0  ;;  %891 = vmatprep.subr.bf16.mxu1 %v1074_v0 }
   0xf   :  { %872 = vmatpush3.bf16.msra.mxu0 %v1151_v4  ;;  %892 = vmatpush3.bf16.msra.mxu1 %v1151_v4 }
  0x10   :  { %873 = vmatprep.subr.bf16.mxu0 %v1074_v0  ;;  %893 = vmatprep.subr.bf16.mxu1 %v1074_v0 }
  0x13   :  { %874 = vmatpush3.bf16.msra.mxu0 %v1158_v5  ;;  %894 = vmatpush3.bf16.msra.mxu1 %v1158_v5 }
  0x14   :  { %875 = vmatprep.subr.bf16.mxu0 %v1074_v0  ;;  %895 = vmatprep.subr.bf16.mxu1 %v1074_v0 }
  0x17   :  { %876 = vmatpush3.bf16.msra.mxu0 %v1169_v6  ;;  %896 = vmatpush3.bf16.msra.mxu1 %v1169_v6 }
  0x18   :  { %877 = vmatprep.subr.bf16.mxu0 %v1074_v0  ;;  %897 = vmatprep.subr.bf16.mxu1 %v1074_v0 }
  0x1b   :  { %878 = vmatpush3.bf16.msra.mxu0 %v1178_v7  ;;  %898 = vmatpush3.bf16.msra.mxu1 %v1178_v7 }
  0x1c   :  { %879 = vmatprep.subr.bf16.mxu0 %v1074_v0  ;;  %899 = vmatprep.subr.bf16.mxu1 %v1074_v0 }
  0x1f   :  { %880 = vmatpush3.bf16.msra.mxu0 %v1187_v8  ;;  %900 = vmatpush3.bf16.msra.mxu1 %v1187_v8 }
  0x20   :  { %905 = vmatprep.subr.bf16.mxu0 %v1074_v0  ;;  %925 = vmatprep.subr.bf16.mxu1 %v1074_v0 }
  0x22   :  { %882 = vmatmul.mubr.bf16.vlgmr.msra.gmra.mrb[0].mxu0 %v1062_v9  ;;  %902 = vmatmul.mubr.bf16.vlgmr.msra.gmra.mrb[0].mxu1 %v1063_v10 }
  0x23   :  { %906 = vmatpush3.bf16.msra.mxu0 %v1122_v1  ;;  %926 = vmatpush3.bf16.msra.mxu1 %v1122_v1 }
  0x24   :  { %907 = vmatprep.subr.bf16.mxu0 %v1074_v0  ;;  %927 = vmatprep.subr.bf16.mxu1 %v1074_v0 }
  0x25   :  { %921 = vmatprep.mubr.msk.bf16.mxu0 %vm1075_vm0, %v1074_v0  ;;  %941 = vmatprep.mubr.msk.bf16.mxu1 %vm1075_vm0, %v1074_v0 }
  0x27   :  { %908 = vmatpush3.bf16.msra.mxu0 %v1133_v2  ;;  %928 = vmatpush3.bf16.msra.mxu1 %v1133_v2 }
  0x28   :  { %909 = vmatprep.subr.bf16.mxu0 %v1074_v0  ;;  %929 = vmatprep.subr.bf16.mxu1 %v1074_v0 }
  0x2b   :  { %910 = vmatpush3.bf16.msra.mxu0 %v1142_v3  ;;  %930 = vmatpush3.bf16.msra.mxu1 %v1142_v3 }
  0x2c   :  { %911 = vmatprep.subr.bf16.mxu0 %v1074_v0  ;;  %931 = vmatprep.subr.bf16.mxu1 %v1074_v0 }
  0x2f   :  { %912 = vmatpush3.bf16.msra.mxu0 %v1151_v4  ;;  %932 = vmatpush3.bf16.msra.mxu1 %v1151_v4 }
  0x30   :  { %913 = vmatprep.subr.bf16.mxu0 %v1074_v0  ;;  %933 = vmatprep.subr.bf16.mxu1 %v1074_v0 }
  0x33   :  { %914 = vmatpush3.bf16.msra.mxu0 %v1158_v5  ;;  %934 = vmatpush3.bf16.msra.mxu1 %v1158_v5 }
  0x34   :  { %915 = vmatprep.subr.bf16.mxu0 %v1074_v0  ;;  %935 = vmatprep.subr.bf16.mxu1 %v1074_v0 }
  0x37   :  { %916 = vmatpush3.bf16.msra.mxu0 %v1169_v6  ;;  %936 = vmatpush3.bf16.msra.mxu1 %v1169_v6 }
  0x38   :  { %917 = vmatprep.subr.bf16.mxu0 %v1074_v0  ;;  %937 = vmatprep.subr.bf16.mxu1 %v1074_v0 }
  0x3b   :  { %918 = vmatpush3.bf16.msra.mxu0 %v1178_v7  ;;  %938 = vmatpush3.bf16.msra.mxu1 %v1178_v7 }
  0x3c   :  { %919 = vmatprep.subr.bf16.mxu0 %v1074_v0  ;;  %939 = vmatprep.subr.bf16.mxu1 %v1074_v0 }
  0x3f   :  { %920 = vmatpush3.bf16.msra.mxu0 %v1187_v8  ;;  %940 = vmatpush3.bf16.msra.mxu1 %v1187_v8 }
  0x40   :  { %957 = vmatprep.subr.bf16.mxu1 %v1074_v0  ;;  %945 = vmatprep.subr.bf16.mxu0 %v1074_v0 }
  0x42   :  { %922 = vmatmul.mubr.bf16.vlgmr.msra.gmra.mrb[4].mxu0 %v1064_v11  ;;  %942 = vmatmul.mubr.bf16.vlgmr.msra.gmra.mrb[4].mxu1 %v1065_v12 }
  0x43   :  { %958 = vmatpush3.bf16.msra.mxu1 %v1122_v1  ;;  %953 = vmatprep.mubr.msk.bf16.mxu0 %vm1075_vm0, %v1074_v0 }
  0x44   :  { %959 = vmatprep.subr.bf16.mxu1 %v1074_v0  ;;  %973 = vmatprep.mubr.msk.bf16.mxu1 %vm1075_vm0, %v1074_v0 }
  0x45   :  { %946 = vmatpush3.bf16.msra.mxu0 %v1066_v13 }
  0x46   :  { %947 = vmatprep.subr.bf16.mxu0 %v1074_v0 }
  0x47   :  { %960 = vmatpush3.bf16.msra.mxu1 %v1133_v2 }
  0x48   :  { %961 = vmatprep.subr.bf16.mxu1 %v1074_v0 }
  0x49   :  { %948 = vmatpush3.bf16.msra.mxu0 %v1067_v14 }
  0x4a   :  { %949 = vmatprep.subr.bf16.mxu0 %v1074_v0 }
  0x4b   :  { %962 = vmatpush3.bf16.msra.mxu1 %v1142_v3 }
  0x4c   :  { %963 = vmatprep.subr.bf16.mxu1 %v1074_v0 }
  0x4d   :  { %950 = vmatpush3.bf16.msra.mxu0 %v1068_v15 }
  0x4e   :  { %951 = vmatprep.subr.bf16.mxu0 %v1074_v0 }
  0x4f   :  { %964 = vmatpush3.bf16.msra.mxu1 %v1151_v4 }
  0x50   :  { %965 = vmatprep.subr.bf16.mxu1 %v1074_v0 }
  0x51   :  { %952 = vmatpush3.bf16.msra.mxu0 %v1069_v16 }
  0x52   :  { %977 = vmatprep.subr.bf16.mxu0 %v1074_v0 }
  0x53   :  { %966 = vmatpush3.bf16.msra.mxu1 %v1158_v5 }
  0x54   :  { %967 = vmatprep.subr.bf16.mxu1 %v1074_v0 }
  0x57   :  { %968 = vmatpush3.bf16.msra.mxu1 %v1169_v6 }
  0x58   :  { %969 = vmatprep.subr.bf16.mxu1 %v1074_v0 }
  0x5b   :  { %970 = vmatpush3.bf16.msra.mxu1 %v1178_v7 }
  0x5c   :  { %971 = vmatprep.subr.bf16.mxu1 %v1074_v0 }
  0x5f   :  { %972 = vmatpush3.bf16.msra.mxu1 %v1187_v8 }
  0x60   :  { %997 = vmatprep.subr.bf16.mxu1 %v1074_v0 }
  0x62   :  { %974 = vmatmul.mubr.bf16.vlgmr.msra.gmra.mrb[8].mxu1 %v1070_v17 }
  0x63   :  { %998 = vmatpush3.bf16.msra.mxu1 %v1122_v1  ;;  %1013 = vmatprep.mubr.msk.bf16.mxu1 %vm1075_vm0, %v1074_v0 }
  0x64   :  { %999 = vmatprep.subr.bf16.mxu1 %v1074_v0 }
  0x67   :  { %1000 = vmatpush3.bf16.msra.mxu1 %v1133_v2 }
  0x68   :  { %1001 = vmatprep.subr.bf16.mxu1 %v1074_v0 }
  0x6b   :  { %1002 = vmatpush3.bf16.msra.mxu1 %v1142_v3 }
  0x6c   :  { %1003 = vmatprep.subr.bf16.mxu1 %v1074_v0 }
  0x6f   :  { %1004 = vmatpush3.bf16.msra.mxu1 %v1151_v4 }
  0x70   :  { %1005 = vmatprep.subr.bf16.mxu1 %v1074_v0 }
  0x73   :  { %1006 = vmatpush3.bf16.msra.mxu1 %v1158_v5 }
  0x74   :  { %1007 = vmatprep.subr.bf16.mxu1 %v1074_v0 }
  0x77   :  { %1008 = vmatpush3.bf16.msra.mxu1 %v1169_v6 }
  0x78   :  { %1009 = vmatprep.subr.bf16.mxu1 %v1074_v0 }
  0x7b   :  { %1010 = vmatpush3.bf16.msra.mxu1 %v1178_v7 }
  0x7c   :  { %1011 = vmatprep.subr.bf16.mxu1 %v1074_v0 }
  0x7f   :  { %1012 = vmatpush3.bf16.msra.mxu1 %v1187_v8 }
  0x80   :  { %1037 = vmatprep.subr.bf16.mxu1 %v1074_v0 }
  0x82   :  { %1014 = vmatmul.mubr.bf16.vlgmr.msra.gmra.mrb[12].mxu1 %v1072_v18 }
  0x83   :  { %1038 = vmatpush3.bf16.msra.mxu1 %v1066_v13  ;;  %1045 = vmatprep.mubr.msk.bf16.mxu1 %vm1075_vm0, %v1074_v0  ;;  %v1378_v13 = vld [vmem:[%s1417_s4] ss:$0 sm:$0xff] }
  0x84   :  { %1039 = vmatprep.subr.bf16.mxu1 %v1074_v0 }
  0x87   :  { %1040 = vmatpush3.bf16.msra.mxu1 %v1067_v14 }
  0x88   :  { %1041 = vmatprep.subr.bf16.mxu1 %v1074_v0 }
  0x8b   :  { %1042 = vmatpush3.bf16.msra.mxu1 %v1068_v15 }
  0x8c   :  { %1043 = vmatprep.subr.bf16.mxu1 %v1074_v0 }
  0x8f   :  { %1044 = vmatpush3.bf16.msra.mxu1 %v1069_v16 }
  0xf5   :  { %v153_v20 = vpop.f32.mrb[0].mxu0  ;;  %v205_v21 = vpop.f32.mrb[0].mxu1 }
  0xf6   :  { %v154_v22 = vadd.f32 %v1311_v19, %v153_v20  ;;  %v206_v23 = vadd.f32 %v1311_v19, %v205_v21  ;;  %v883_v24 = vpop.f32.mrb[1].mxu0  ;;  %v903_v25 = vpop.f32.mrb[1].mxu1 }
  0xf7   :  { %v156_v26 = vpop.f32.mrb[2].mxu0  ;;  %v208_v27 = vpop.f32.mrb[2].mxu1 }
  0xf8   :  { %v160_v28 = vmax.f32 %v154_v22, 0.0  ;;  %v212_v29 = vmax.f32 %v206_v23, 0.0  ;;  %v157_v30 = vadd.f32 %v1311_v19, %v156_v26  ;;  %v209_v31 = vadd.f32 %v1311_v19, %v208_v27  ;;  %v884_v32 = vpop.f32.mrb[3].mxu0  ;;  %v904_v33 = vpop.f32.mrb[3].mxu1 }
  0xfa   :  { %v214_v34 = vadd.f32 %v212_v29, %v160_v28  ;;  %v161_v35 = vmax.f32 %v157_v30, 0.0  ;;  %v213_v36 = vmax.f32 %v209_v31, 0.0  ;;  %v1076_v28 = vmov 0  }
  0xfb   :  { %1052 = vset.pattern.permute.xlu0 %v1076_v28  ;;  %1053 = vset.pattern.permute.xlu1 %v1076_v28 }
  0xfc   :  { %v215_v37 = vadd.f32 %v213_v36, %v161_v35 }
 0x115   :  { %v259_v38 = vpop.f32.mrb[4].mxu0  ;;  %v313_v39 = vpop.f32.mrb[4].mxu1 }
 0x116   :  { %v260_v40 = vadd.f32 %v1311_v19, %v259_v38  ;;  %v314_v41 = vadd.f32 %v1311_v19, %v313_v39  ;;  %v923_v42 = vpop.f32.mrb[5].mxu0  ;;  %v943_v43 = vpop.f32.mrb[5].mxu1 }
 0x117   :  { %v262_v44 = vpop.f32.mrb[6].mxu0  ;;  %v316_v45 = vpop.f32.mrb[6].mxu1 }
 0x118   :  { %v266_v46 = vmax.f32 %v260_v40, 0.0  ;;  %v320_v47 = vmax.f32 %v314_v41, 0.0  ;;  %v263_v48 = vadd.f32 %v1311_v19, %v262_v44  ;;  %v317_v49 = vadd.f32 %v1311_v19, %v316_v45  ;;  %v924_v50 = vpop.f32.mrb[7].mxu0  ;;  %v944_v51 = vpop.f32.mrb[7].mxu1 }
 0x11a   :  { %v268_v52 = vadd.f32 %v266_v46, %v214_v34  ;;  %v267_v53 = vmax.f32 %v263_v48, 0.0  ;;  %v321_v56 = vmax.f32 %v317_v49, 0.0 }
 0x11c   :  { %v322_v54 = vadd.f32 %v320_v47, %v268_v52  ;;  %v269_v55 = vadd.f32 %v267_v53, %v215_v37 }
 0x11e   :  { %v323_v57 = vadd.f32 %v321_v56, %v269_v55  ;;  %v1321_v58 = vmul.f32 0.25, %v322_v54 }
 0x120   :  { %v1323_v59 = vmul.f32 0.25, %v323_v57 }
 0x122   :  { %v326_v60 = vpack.c.bf16 %v1323_v59, %v1321_v58 }
 0x124   :  { %954 = vmatmul.mubr.msk.bf16.vlgmr.msra.gmra.mrb[8].mxu0 %vm357_vm1, %v326_v60 }
 0x125   :  { %978 = vmatpush3.bf16.msra.mxu0 %v1122_v1  ;;  %993 = vmatprep.mubr.msk.bf16.mxu0 %vm1075_vm0, %v1074_v0 }
 0x126   :  { %979 = vmatprep.subr.bf16.mxu0 %v1074_v0 }
 0x129   :  { %980 = vmatpush3.bf16.msra.mxu0 %v1133_v2 }
 0x12a   :  { %981 = vmatprep.subr.bf16.mxu0 %v1074_v0 }
 0x12d   :  { %982 = vmatpush3.bf16.msra.mxu0 %v1142_v3 }
 0x12e   :  { %983 = vmatprep.subr.bf16.mxu0 %v1074_v0 }
 0x131   :  { %984 = vmatpush3.bf16.msra.mxu0 %v1151_v4 }
 0x132   :  { %985 = vmatprep.subr.bf16.mxu0 %v1074_v0 }
 0x135   :  { %986 = vmatpush3.bf16.msra.mxu0 %v1158_v5  ;;  %v481_v63 = vpop.f32.mrb[8].mxu1 }
 0x136   :  { %987 = vmatprep.subr.bf16.mxu0 %v1074_v0  ;;  %v482_v29 = vadd.f32 %v1311_v19, %v481_v63 }
 0x138   :  { %v488_v32 = vmax.f32 %v482_v29, 0.0 }
 0x139   :  { %988 = vmatpush3.bf16.msra.mxu0 %v1169_v6 }
 0x13a   :  { %989 = vmatprep.subr.bf16.mxu0 %v1074_v0 }
 0x13d   :  { %990 = vmatpush3.bf16.msra.mxu0 %v1178_v7 }
 0x13e   :  { %991 = vmatprep.subr.bf16.mxu0 %v1074_v0 }
 0x141   :  { %992 = vmatpush3.bf16.msra.mxu0 %v1187_v8 }
 0x142   :  { %1017 = vmatprep.subr.bf16.mxu0 %v1074_v0 }
 0x144   :  { %994 = vmatmul.mubr.bf16.vlgmr.msra.gmra.mrb[12].mxu0 %v1071_v61 }
 0x145   :  { %1018 = vmatpush3.bf16.msra.mxu0 %v1122_v1  ;;  %1033 = vmatprep.mubr.msk.bf16.mxu0 %vm1075_vm0, %v1074_v0  ;;  %v975_v1 = vpop.f32.mrb[9].mxu1 }
 0x146   :  { %1019 = vmatprep.subr.bf16.mxu0 %v1074_v0 }
 0x149   :  { %1020 = vmatpush3.bf16.msra.mxu0 %v1133_v2  ;;  %v484_v2 = vpop.f32.mrb[10].mxu1 }
 0x14a   :  { %1021 = vmatprep.subr.bf16.mxu0 %v1074_v0  ;;  %v485_v33 = vadd.f32 %v1311_v19, %v484_v2 }
 0x14c   :  { %v489_v42 = vmax.f32 %v485_v33, 0.0 }
 0x14d   :  { %1022 = vmatpush3.bf16.msra.mxu0 %v1142_v3  ;;  %v976_v3 = vpop.f32.mrb[11].mxu1 }
 0x14e   :  { %1023 = vmatprep.subr.bf16.mxu0 %v1074_v0 }
 0x151   :  { %1024 = vmatpush3.bf16.msra.mxu0 %v1151_v4 }
 0x152   :  { %1025 = vmatprep.subr.bf16.mxu0 %v1074_v0 }
 0x155   :  { %1026 = vmatpush3.bf16.msra.mxu0 %v1158_v5  ;;  %v587_v4 = vpop.f32.mrb[12].mxu1 }
 0x156   :  { %1027 = vmatprep.subr.bf16.mxu0 %v1074_v0  ;;  %v1015_v5 = vpop.f32.mrb[13].mxu1  ;;  %v588_v30 = vadd.f32 %v1311_v19, %v587_v4 }
 0x158   :  { %v594_v40 = vmax.f32 %v588_v30, 0.0 }
 0x159   :  { %1028 = vmatpush3.bf16.msra.mxu0 %v1169_v6  ;;  %v590_v6 = vpop.f32.mrb[14].mxu1 }
 0x15a   :  { %1029 = vmatprep.subr.bf16.mxu0 %v1074_v0  ;;  %v1016_v9 = vpop.f32.mrb[15].mxu1  ;;  %v591_v36 = vadd.f32 %v1311_v19, %v590_v6 }
 0x15c   :  { %v595_v45 = vmax.f32 %v591_v36, 0.0 }
 0x15d   :  { %1030 = vmatpush3.bf16.msra.mxu0 %v1178_v7  ;;  %v12_v7 = vstv %s1415_s6 }
 0x15e   :  { %1031 = vmatprep.subr.bf16.mxu0 %v1074_v0  ;;  %13 = vst [vmem:[#allocation2] sm:$0x1] %v12_v7  ;;  %v405_v0 = vlaneseq }
 0x160   :  { %v406_v10 = vshrl.u32 %v405_v0, 7 }
 0x161   :  { %1032 = vmatpush3.bf16.msra.mxu0 %v1187_v8  ;;  %v55_v8 = vld [vmem:[%s1416_s5] sm:$0x1] }
 0x162   :  { %v404_v11 = vunpack.c.l.bf16 %v55_v8  ;;  %v407_v12 = vsub.s32 0, %v406_v10 }
 0x164   :  { %1034 = vmatmul.mubr.bf16.vlgmr.msra.gmra.mrb[16].mxu0 %v1073_v62  ;;  %v1381_v17 = vrot.slane %v404_v11, %v407_v12 }
 0x165   :  { %v765_v1 = vld [vmem:[#allocation2] ss:$0 sm:$0xff] }
 0x1f7   :  { %v395_v14 = vpop.f32.mrb[8].mxu0 }
 0x1f8   :  { %v396_v15 = vadd.f32 %v1378_v13, %v395_v14  ;;  %v955_v16 = vpop.f32.mrb[9].mxu0 }
 0x1f9   :  { %v398_v18 = vpop.f32.mrb[10].mxu0 }
 0x1fa   :  { %v402_v20 = vmax.f32 %v396_v15, 0.0  ;;  %v399_v21 = vadd.f32 %v1378_v13, %v398_v18  ;;  %v956_v22 = vpop.f32.mrb[11].mxu0 }
 0x1fc   :  { %v403_v23 = vmax.f32 %v399_v21, 0.0  ;;  %v409_v24 = vmul.f32 %v1381_v17, %v402_v20 }
 0x1fe   :  { %v412_v25 = vsel %vm411_vm2, %v409_v24, 0.0  ;;  %v410_v26 = vmul.f32 %v1381_v17, %v403_v23 }
 0x1ff   :  { %413 = vadd.xlane.f32.xlu0 %v412_v25 }
 0x200   :  { %v415_v27 = vsel %vm411_vm2, %v410_v26, 0.0 }
 0x203   :  { %416 = vadd.xlane.f32.xlu0 %v415_v27 }
 0x217   :  { %v533_v31 = vpop.f32.mrb[12].mxu0 }
 0x218   :  { %v534_v34 = vadd.f32 %v1311_v19, %v533_v31  ;;  %v995_v35 = vpop.f32.mrb[13].mxu0 }
 0x219   :  { %v536_v37 = vpop.f32.mrb[14].mxu0 }
 0x21a   :  { %v540_v38 = vmax.f32 %v534_v34, 0.0  ;;  %v537_v39 = vadd.f32 %v1311_v19, %v536_v37  ;;  %v996_v41 = vpop.f32.mrb[15].mxu0 }
 0x21c   :  { %v542_v43 = vadd.f32 %v540_v38, %v488_v32  ;;  %v541_v44 = vmax.f32 %v537_v39, 0.0 }
 0x21e   :  { %v543_v46 = vadd.f32 %v541_v44, %v489_v42  ;;  %v596_v47 = vadd.f32 %v594_v40, %v542_v43 }
 0x220   :  { %v597_v48 = vadd.f32 %v595_v45, %v543_v46 }
 0x237   :  { %v641_v49 = vpop.f32.mrb[16].mxu0 }
 0x238   :  { %v642_v50 = vadd.f32 %v1311_v19, %v641_v49  ;;  %v1035_v51 = vpop.f32.mrb[17].mxu0 }
 0x239   :  { %v644_v52 = vpop.f32.mrb[18].mxu0 }
 0x23a   :  { %v648_v53 = vmax.f32 %v642_v50, 0.0  ;;  %v645_v54 = vadd.f32 %v1311_v19, %v644_v52  ;;  %v1036_v55 = vpop.f32.mrb[19].mxu0 }
 0x23c   :  { %v650_v56 = vadd.f32 %v648_v53, %v596_v47  ;;  %v649_v57 = vmax.f32 %v645_v54, 0.0 }
 0x23e   :  { %v651_v60 = vadd.f32 %v649_v57, %v597_v48  ;;  %v652_v61 = vmul.f32 0.25, %v650_v56 }
 0x240   :  { %v653_v62 = vmul.f32 0.25, %v651_v60 }
 0x242   :  { %v654_v63 = vpack.c.bf16 %v653_v62, %v652_v61 }
 0x244   :  { %1046 = vmatmul.mubr.msk.bf16.vlgmr.msra.gmra.mrb[16].mxu1 %vm357_vm1, %v654_v63 }
 0x28c   :  { %v414_v2 = vpop.xlane.xlu0 %413 }
 0x28d   :  { %v424_v3 = vadd.f32 %v765_v1, %v414_v2 }
 0x28f   :  { %428 = vperm.xlu0 %1052, %v424_v3  }
 0x290   :  { %v417_v15 = vpop.xlane.xlu0 %416 }
 0x291   :  { %v425_v16 = vadd.f32 %v765_v1, %v417_v15 }
 0x30e   :  { %v429_v23 = vpop.permute.xlu0 %428 }
 0x30f   :  { %v436_v25 = vmul.f32 %v429_v23, %v1321_v58 }
 0x317   :  { %v692_v4 = vpop.f32.mrb[16].mxu1 }
 0x318   :  { %v693_v5 = vadd.f32 %v1378_v13, %v692_v4  ;;  %v1047_v6 = vpop.f32.mrb[17].mxu1 }
 0x319   :  { %v695_v9 = vpop.f32.mrb[18].mxu1 }
 0x31a   :  { %v699_v7 = vmax.f32 %v693_v5, 0.0  ;;  %v696_v19 = vadd.f32 %v1378_v13, %v695_v9  ;;  %v1048_v0 = vpop.f32.mrb[19].mxu1 }
 0x31c   :  { %v700_v10 = vmax.f32 %v696_v19, 0.0  ;;  %v701_v8 = vmul.f32 %v699_v7, %v1381_v17 }
 0x31e   :  { %v703_v11 = vsel %vm411_vm2, %v701_v8, 0.0  ;;  %v702_v12 = vmul.f32 %v700_v10, %v1381_v17 }
 0x31f   :  { %704 = vadd.xlane.f32.xlu1 %v703_v11 }
 0x320   :  { %v706_v14 = vsel %vm411_vm2, %v702_v12, 0.0 }
 0x323   :  { %707 = vadd.xlane.f32.xlu1 %v706_v14 }
 0x334   :  { %433 = vperm.xlu1 %1053, %v425_v16  }
 0x3ac   :  { %v705_v18 = vpop.xlane.xlu1 %704 }
 0x3ad   :  { %v709_v20 = vadd.f32 %v765_v1, %v705_v18 }
 0x3af   :  { %713 = vperm.xlu1 %1053, %v709_v20  }
 0x3b0   :  { %v708_v21 = vpop.xlane.xlu1 %707 }
 0x3b1   :  { %v710_v13 = vadd.f32 %v765_v1, %v708_v21 }
 0x3b3   :  { %718 = vperm.xlu1 %1053, %v710_v13  }
 0x3b4   :  { %v434_v22 = vpop.permute.xlu1 %433 }
 0x3b5   :  { %v437_v28 = vmul.f32 %v434_v22, %v1323_v59 }
 0x42e   :  { %v714_v24 = vpop.permute.xlu1 %713 }
 0x42f   :  { %v721_v26 = vmul.f32 %v714_v24, %v652_v61 }
 0x431   :  { %v723_v17 = vadd.f32 %v721_v26, %v436_v25 }
 0x432   :  { %v719_v27 = vpop.permute.xlu1 %718 }
 0x433   :  { %v781_v29 = vpack.c.bf16 %v723_v17, %v723_v17  ;;  %v722_v30 = vmul.f32 %v719_v27, %v653_v62 }
 0x435   :  { %734 = vst.msk [vmem:[%s1418_s7] sm:$0xf] %vm733_vm3, %v781_v29  ;;  %v724_v31 = vadd.f32 %v722_v30, %v437_v28 }
 0x437   :  { %v782_v32 = vpack.c.bf16 %v724_v31, %v724_v31 }
 0x439   :  { %735 = vst.msk [vmem:[%s1418_s7 + $0x4] sm:$0xf] %vm733_vm3, %v782_v32 }

</bundles_post_ra>
